<compile_context>
chip_gen: v7x
topology: tpu7x:2x2x1
jax: 0.10.0
libtpu: 0.0.40
codegen_flags: <defaults>
</compile_context>

<pallas_src>
import functools

import jax
import jax.numpy as jnp
from jax.experimental import pallas as pl
from jax.experimental.pallas import tpu as pltpu


def _round_up(x, m):
    return (x + m - 1) // m * m


def _vmem_capacity_bytes():
    """Physical VMEM per TensorCore (128 MiB on v5e/v6e, 64 MiB on v7x)."""
    try:
        return int(pltpu.get_tpu_info().vmem_capacity_bytes)
    except Exception:
        return 64 * 1024 * 1024  # conservative default (v7x per-TC)


# ----------------------------------------------------------------------------- kernels
def _ffn_kernel_resident(x_ref, w1_ref, b1_ref, w2_ref, b2_ref, o_ref):
    # Full-weight-residency path: W1/W2/b1/b2 have constant index_maps, so they
    # cross HBM exactly once for the whole grid.
    h = jnp.dot(x_ref[...], w1_ref[...], preferred_element_type=jnp.float32)
    h = h + b1_ref[...]
    # TODO(synk): training-mode dropout (stochastic mask via pltpu.prng_*) not
    # implemented; eval-mode identity.  (Dropout precedes ReLU in the module.)
    h = jnp.maximum(h, 0.0)
    out = jnp.dot(h.astype(w2_ref.dtype), w2_ref[...],
                  preferred_element_type=jnp.float32)
    o_ref[...] = (out + b2_ref[...]).astype(o_ref.dtype)


def _ffn_kernel_chunked_out(x_ref, w1_ref, b1_ref, w2_ref, b2_ref, o_ref):
    # Hidden dim streamed in (th) chunks.  Output is f32 and resident across the
    # j axis, so partials are accumulated directly into o_ref (no scratch).
    j = pl.program_id(1)

    @pl.when(j == 0)
    def _():
        o_ref[...] = jnp.zeros_like(o_ref)

    h = jnp.dot(x_ref[...], w1_ref[...], preferred_element_type=jnp.float32)
    h = jnp.maximum(h + b1_ref[...], 0.0)   # eval-mode dropout = identity
    o_ref[...] += jnp.dot(h.astype(w2_ref.dtype), w2_ref[...],
                          preferred_element_type=jnp.float32)

    @pl.when(j == pl.num_programs(1) - 1)
    def _():
        o_ref[...] = o_ref[...] + b2_ref[...]


def _ffn_kernel_chunked_scratch(x_ref, w1_ref, b1_ref, w2_ref, b2_ref, o_ref,
                                acc_ref):
    # Chunked path when the output dtype is not f32: accumulate in a f32 scratch.
    j = pl.program_id(1)

    @pl.when(j == 0)
    def _():
        acc_ref[...] = jnp.zeros_like(acc_ref)

    h = jnp.dot(x_ref[...], w1_ref[...], preferred_element_type=jnp.float32)
    h = jnp.maximum(h + b1_ref[...], 0.0)
    acc_ref[...] += jnp.dot(h.astype(w2_ref.dtype), w2_ref[...],
                            preferred_element_type=jnp.float32)

    @pl.when(j == pl.num_programs(1) - 1)
    def _():
        o_ref[...] = (acc_ref[...] + b2_ref[...]).astype(o_ref.dtype)


# ----------------------------------------------------------------------------- wrapper
@functools.partial(jax.jit,
                   static_argnames=("tm", "compute_dtype", "force_chunked"))
def position_wise_feed_forward(x, w1, b1, w2, b2, *, tm=512,
                               compute_dtype=jnp.bfloat16, force_chunked=False):
    """x: [B, S, D].  w1: [D, H], b1: [H], w2: [H, D], b2: [D].

    Weights are stored pre-transposed ([in_features, out_features]).  For best
    performance pass weights already cast to `compute_dtype` (default bf16) so no
    per-call re-cast touches HBM; accumulation is always f32.
    """
    orig_dtype = x.dtype
    B, S, D = x.shape
    H = w1.shape[1]
    M = B * S

    if compute_dtype is None:
        compute_dtype = x.dtype

    # --- dtypes ---------------------------------------------------------------
    x2d = x.reshape(M, D).astype(compute_dtype)
    if w1.dtype != compute_dtype:          # avoid re-casting pre-cast weights
        w1 = w1.astype(compute_dtype)
    if w2.dtype != compute_dtype:
        w2 = w2.astype(compute_dtype)
    b1 = b1.astype(jnp.float32)
    b2 = b2.astype(jnp.float32)

    x_it = jnp.dtype(compute_dtype).itemsize
    w_it = x_it
    o_it = jnp.dtype(orig_dtype).itemsize

    # --- lane-dense feature padding, row tiling ---------------------------------
    Dp = _round_up(D, 128)
    tm_eff = min(tm, _round_up(M, 8))
    Mp = _round_up(M, tm_eff)
    # Guarantee >=2 row blocks so the "parallel" axis can split across v7x's 2 TCs.
    if Mp // tm_eff < 2 and tm_eff > 8:
        tm_eff = max(8, _round_up((tm_eff + 1) // 2, 8))
        Mp = _round_up(M, tm_eff)
    n_m = Mp // tm_eff

    # --- VMEM budget (generation aware) -----------------------------------------
    vmem_cap = _vmem_capacity_bytes()
    if vmem_cap >= (100 << 20):            # v5e / v6e (128 MiB per TC)
        vmem_limit = 96 << 20
    else:                                   # v7x (64 MiB per TC)
        vmem_limit = max(32 << 20, min(48 << 20, vmem_cap - (16 << 20)))
    budget = (vmem_limit * 4) // 5          # headroom for Mosaic internal scratch

    def _fixed_bytes(tm_, o_bytes):
        # double-buffered x tile + (resident) out tile + b2
        return 2 * tm_ * Dp * x_it + 2 * tm_ * Dp * o_bytes + 2 * Dp * 4

    # --- residency decision ------------------------------------------------------
    Hp_res = _round_up(H, 128)
    resident_bytes = (2 * 2 * Dp * Hp_res * w_it          # W1 + W2 (2 buffers each)
                      + 2 * Hp_res * 4                    # b1
                      + _fixed_bytes(tm_eff, o_it)
                      + tm_eff * Hp_res * (4 + w_it))     # h (f32) + its cast
    use_resident = (not force_chunked) and resident_bytes <= budget

    if use_resident:
        Hp = Hp_res
        w_fetch = 1
    else:
        acc_in_out = (orig_dtype == jnp.float32)
        o_acc_it = 4 if acc_in_out else o_it
        # VMEM-budgeted hidden-chunk size th (shrink tm if even th=128 won't fit).
        while True:
            fixed = (_fixed_bytes(tm_eff, o_acc_it)
                     + (0 if acc_in_out else tm_eff * Dp * 4))
            per_th = 2 * 2 * Dp * w_it + 2 * 4 + tm_eff * (4 + w_it)
            th = max(0, (budget - fixed) // per_th)
            th = min(th, 2048, _round_up(H, 128))
            th = (th // 128) * 128
            if th >= 128 or tm_eff <= 8:
                break
            tm_eff = max(8, _round_up(tm_eff // 2, 8))
            Mp = _round_up(M, tm_eff)
        th = max(th, 128)
        if force_chunked:
            th = 128
        n_m = Mp // tm_eff
        # Pad H up to a multiple of th (zero-padded hidden columns contribute 0).
        Hp = _round_up(H, th)
        w_fetch = n_m

    # --- padding -----------------------------------------------------------------
    xp = jnp.pad(x2d, ((0, Mp - M), (0, Dp - D)))
    w1p = jnp.pad(w1, ((0, Dp - D), (0, Hp - H)))
    b1p = jnp.pad(b1, ((0, Hp - H),)).reshape(1, Hp)
    w2p = jnp.pad(w2, ((0, Hp - H), (0, Dp - D)))
    b2p = jnp.pad(b2, ((0, Dp - D),)).reshape(1, Dp)

    cost = pl.CostEstimate(
        flops=4 * Mp * Dp * Hp,             # 2*M*D*H per linear layer (padded)
        transcendentals=0,
        bytes_accessed=(Mp * Dp * x_it
                        + w_fetch * 2 * Dp * Hp * w_it
                        + (Hp + Dp) * 4
                        + Mp * Dp * o_it),
    )

    if use_resident:
        out2d = pl.pallas_call(
            _ffn_kernel_resident,
            out_shape=jax.ShapeDtypeStruct((Mp, Dp), orig_dtype),
            grid_spec=pltpu.PrefetchScalarGridSpec(
                num_scalar_prefetch=0,
                grid=(n_m,),
                in_specs=[
                    pl.BlockSpec((tm_eff, Dp), lambda i: (i, 0)),   # x row tile
                    pl.BlockSpec((Dp, Hp), lambda i: (0, 0)),       # W1 (resident)
                    pl.BlockSpec((1, Hp), lambda i: (0, 0)),        # b1 (resident)
                    pl.BlockSpec((Hp, Dp), lambda i: (0, 0)),       # W2 (resident)
                    pl.BlockSpec((1, Dp), lambda i: (0, 0)),        # b2 (resident)
                ],
                out_specs=pl.BlockSpec((tm_eff, Dp), lambda i: (i, 0)),
            ),
            compiler_params=pltpu.CompilerParams(
                dimension_semantics=("parallel",),
                vmem_limit_bytes=vmem_limit,
            ),
            cost_estimate=cost,
        )(xp, w1p, b1p, w2p, b2p)
    else:
        if acc_in_out:
            kernel = _ffn_kernel_chunked_out
            scratch = []
        else:
            kernel = _ffn_kernel_chunked_scratch
            scratch = [pltpu.VMEM((tm_eff, Dp), jnp.float32)]
        out2d = pl.pallas_call(
            kernel,
            out_shape=jax.ShapeDtypeStruct((Mp, Dp), orig_dtype),
            grid_spec=pltpu.PrefetchScalarGridSpec(
                num_scalar_prefetch=0,
                grid=(n_m, Hp // th),
                in_specs=[
                    pl.BlockSpec((tm_eff, Dp), lambda i, j: (i, 0)),  # x row tile
                    pl.BlockSpec((Dp, th), lambda i, j: (0, j)),      # W1 chunk
                    pl.BlockSpec((1, th), lambda i, j: (0, j)),       # b1 chunk
                    pl.BlockSpec((th, Dp), lambda i, j: (j, 0)),      # W2 chunk
                    pl.BlockSpec((1, Dp), lambda i, j: (0, 0)),       # b2
                ],
                out_specs=pl.BlockSpec((tm_eff, Dp), lambda i, j: (i, 0)),
                scratch_shapes=scratch,
            ),
            compiler_params=pltpu.CompilerParams(
                dimension_semantics=("parallel", "arbitrary"),
                vmem_limit_bytes=vmem_limit,
            ),
            cost_estimate=cost,
        )(xp, w1p, b1p, w2p, b2p)

    return out2d[:M, :D].reshape(B, S, D)


# ----------------------------------------------------------------------------- test
def _torch_like_linear_init(key, in_features, out_features, dtype=jnp.float32):
    """Deterministic init mimicking nn.Linear defaults (uniform +-1/sqrt(in))."""
    kw, kb = jax.random.split(key)
    bound = 1.0 / (in_features ** 0.5)
    # weight stored transposed: [in_features, out_features]
    w = jax.random.uniform(kw, (in_features, out_features), dtype,
                           minval=-bound, maxval=bound)
    b = jax.random.uniform(kb, (out_features,), dtype,
                           minval=-bound, maxval=bound)
    return w, b


if __name__ == "__main__":
    key = jax.random.PRNGKey(0)
    k_x, k_l1, k_l2 = jax.random.split(key, 3)

    batch, seq, input_dim, hidden_dim = 2, 8, 32, 64

    x = jax.random.normal(k_x, (batch, seq, input_dim), jnp.float32)
    w1, b1 = _torch_like_linear_init(k_l1, input_dim, hidden_dim)
    w2, b2 = _torch_like_linear_init(k_l2, hidden_dim, input_dim)

    # Pure-JAX reference (dropout = identity in eval mode).
    ref = jnp.maximum(x @ w1 + b1, 0.0) @ w2 + b2

    # 1) Default path: bf16 operands (pre-cast once, as a caller would cache them),
    #    f32 accumulation, full-weight residency.
    w1_bf16, w2_bf16 = w1.astype(jnp.bfloat16), w2.astype(jnp.bfloat16)
    out = position_wise_feed_forward(x, w1_bf16, b1, w2_bf16, b2)
    jax.block_until_ready(out)
    assert out.shape == (batch, seq, input_dim)
    assert out.dtype == x.dtype
    assert jnp.allclose(out, ref, atol=3e-2, rtol=3e-2)

    # 2) f32 operands: tight tolerance vs the reference.
    out_f32 = position_wise_feed_forward(x, w1, b1, w2, b2,
                                         compute_dtype=jnp.float32)
    jax.block_until_ready(out_f32)
    assert jnp.allclose(out_f32, ref, atol=1e-4, rtol=1e-4)

    # 3) Chunked (hidden-dim streamed) fallback path, f32, accumulates into o_ref.
    hidden_big = 384
    w1b, b1b = _torch_like_linear_init(k_l1, input_dim, hidden_big)
    w2b, b2b = _torch_like_linear_init(k_l2, hidden_big, input_dim)
    ref_b = jnp.maximum(x @ w1b + b1b, 0.0) @ w2b + b2b
    out_b = position_wise_feed_forward(x, w1b, b1b, w2b, b2b,
                                       compute_dtype=jnp.float32,
                                       force_chunked=True)
    jax.block_until_ready(out_b)
    assert jnp.allclose(out_b, ref_b, atol=1e-4, rtol=1e-4)

    # 4) Chunked fallback with a non-f32 output dtype (exercises the scratch variant).
    x_bf16 = x.astype(jnp.bfloat16)
    out_c = position_wise_feed_forward(x_bf16, w1b.astype(jnp.bfloat16), b1b,
                                       w2b.astype(jnp.bfloat16), b2b,
                                       force_chunked=True)
    jax.block_until_ready(out_c)
    assert out_c.dtype == jnp.bfloat16
    assert jnp.allclose(out_c.astype(jnp.float32), ref_b, atol=6e-2, rtol=6e-2)

    print("KERNEL_OK")
</pallas_src>

<mosaic_0001>
module attributes {stable_mosaic.version = 11 : i64} {
  func.func @_ffn_kernel_resident(%arg0: i32, %arg1: memref<8x128xbf16, #tpu.memory_space<vmem>>, %arg2: memref<128x128xbf16, #tpu.memory_space<vmem>>, %arg3: memref<1x128xf32, #tpu.memory_space<vmem>>, %arg4: memref<128x128xbf16, #tpu.memory_space<vmem>>, %arg5: memref<1x128xf32, #tpu.memory_space<vmem>>, %arg6: memref<8x128xf32, #tpu.memory_space<vmem>>) attributes {dimension_semantics = [#tpu.dimension_semantics<parallel>], iteration_bounds = array<i64: 2>, scalar_prefetch = 0 : i64, scratch_operands = 0 : i64, tpu.core_type = #tpu.core_type<tc>, window_params = [{transform_indices = @transform_0, window_bounds = array<i64: 8, 128>}, {pipeline_mode = #tpu.pipeline_mode<synchronous>, transform_indices = @transform_1, window_bounds = array<i64: 128, 128>}, {pipeline_mode = #tpu.pipeline_mode<synchronous>, transform_indices = @transform_2, window_bounds = array<i64: 1, 128>}, {pipeline_mode = #tpu.pipeline_mode<synchronous>, transform_indices = @transform_3, window_bounds = array<i64: 128, 128>}, {pipeline_mode = #tpu.pipeline_mode<synchronous>, transform_indices = @transform_4, window_bounds = array<i64: 1, 128>}, {transform_indices = @transform_5, window_bounds = array<i64: 8, 128>}]} {
    %c0 = arith.constant 0 : index
    %c0_0 = arith.constant 0 : index
    %0 = vector.load %arg1[%c0, %c0_0] : memref<8x128xbf16, #tpu.memory_space<vmem>>, vector<8x128xbf16>
    %c0_1 = arith.constant 0 : index
    %c0_2 = arith.constant 0 : index
    %1 = vector.load %arg2[%c0_1, %c0_2] : memref<128x128xbf16, #tpu.memory_space<vmem>>, vector<128x128xbf16>
    %cst = arith.constant dense<0.000000e+00> : vector<8x128xf32>
    %2 = tpu.matmul %0, %1, %cst {dimension_numbers = #tpu.dot_dimension_numbers<[1], [0], [0], [1], [0, 0, 1, 1], [], []>} : vector<8x128xbf16>, vector<128x128xbf16>, vector<8x128xf32> -> vector<8x128xf32>
    %c0_3 = arith.constant 0 : index
    %c0_4 = arith.constant 0 : index
    %3 = vector.load %arg3[%c0_3, %c0_4] : memref<1x128xf32, #tpu.memory_space<vmem>>, vector<1x128xf32>
    %4 = vector.broadcast %3 : vector<1x128xf32> to vector<8x128xf32>
    %5 = arith.addf %2, %4 : vector<8x128xf32>
    %cst_5 = arith.constant 0.000000e+00 : f32
    %6 = vector.broadcast %cst_5 : f32 to vector<8x128xf32>
    %7 = arith.maximumf %5, %6 : vector<8x128xf32>
    %8 = arith.truncf %7 : vector<8x128xf32> to vector<8x128xbf16>
    %c0_6 = arith.constant 0 : index
    %c0_7 = arith.constant 0 : index
    %9 = vector.load %arg4[%c0_6, %c0_7] : memref<128x128xbf16, #tpu.memory_space<vmem>>, vector<128x128xbf16>
    %cst_8 = arith.constant dense<0.000000e+00> : vector<8x128xf32>
    %10 = tpu.matmul %8, %9, %cst_8 {dimension_numbers = #tpu.dot_dimension_numbers<[1], [0], [0], [1], [0, 0, 1, 1], [], []>} : vector<8x128xbf16>, vector<128x128xbf16>, vector<8x128xf32> -> vector<8x128xf32>
    %c0_9 = arith.constant 0 : index
    %c0_10 = arith.constant 0 : index
    %11 = vector.load %arg5[%c0_9, %c0_10] : memref<1x128xf32, #tpu.memory_space<vmem>>, vector<1x128xf32>
    %12 = vector.broadcast %11 : vector<1x128xf32> to vector<8x128xf32>
    %13 = arith.addf %10, %12 : vector<8x128xf32>
    %c0_11 = arith.constant 0 : index
    %c0_12 = arith.constant 0 : index
    %14 = vector.load %arg6[%c0_11, %c0_12] : memref<8x128xf32, #tpu.memory_space<vmem>>, vector<8x128xf32>
    tpu.vector_store %arg6[%c0_11, %c0_12], %13 {strides = array<i32>} : memref<8x128xf32, #tpu.memory_space<vmem>>, vector<8x128xf32>,
    return
  }
  func.func @transform_0(%arg0: i32) -> (i32, i32) {
    %c0_i32 = arith.constant 0 : i32
    %c0_i32_0 = arith.constant 0 : i32
    return %arg0, %c0_i32 : i32, i32
  }
  func.func @transform_1(%arg0: i32) -> (i32, i32) {
    %c0_i32 = arith.constant 0 : i32
    %c0_i32_0 = arith.constant 0 : i32
    %c0_i32_1 = arith.constant 0 : i32
    return %c0_i32, %c0_i32_0 : i32, i32
  }
  func.func @transform_2(%arg0: i32) -> (i32, i32) {
    %c0_i32 = arith.constant 0 : i32
    %c0_i32_0 = arith.constant 0 : i32
    %c0_i32_1 = arith.constant 0 : i32
    return %c0_i32, %c0_i32_0 : i32, i32
  }
  func.func @transform_3(%arg0: i32) -> (i32, i32) {
    %c0_i32 = arith.constant 0 : i32
    %c0_i32_0 = arith.constant 0 : i32
    %c0_i32_1 = arith.constant 0 : i32
    return %c0_i32, %c0_i32_0 : i32, i32
  }
  func.func @transform_4(%arg0: i32) -> (i32, i32) {
    %c0_i32 = arith.constant 0 : i32
    %c0_i32_0 = arith.constant 0 : i32
    %c0_i32_1 = arith.constant 0 : i32
    return %c0_i32, %c0_i32_0 : i32, i32
  }
  func.func @transform_5(%arg0: i32) -> (i32, i32) {
    %c0_i32 = arith.constant 0 : i32
    %c0_i32_0 = arith.constant 0 : i32
    return %arg0, %c0_i32 : i32, i32
  }
}

</mosaic_0001>

<bundles_post_ra>
// kernel: position_wise_feed_forward.1
= control target key start
LH: loop header
LB: loop body
LE: loop exit
PB: predicated region body
PF: predicated region fallthrough
CT: control target
= control target key end

     0   :  { %s651_s18 = smov 0   ;;  %s730_s0 = inlined_call_operand.vmem [shape: bf16[16,128], index: 0, kind: input, shape index: {}]   ;;  %s731_s1 = inlined_call_operand.vmem [shape: bf16[128,128], index: 1, kind: input, shape index: {}]   ;;  %s732_s2 = inlined_call_operand.vmem [shape: f32[1,128], index: 2, kind: input, shape index: {}]   ;;  %s733_s3 = inlined_call_operand.vmem [shape: bf16[128,128], index: 3, kind: input, shape index: {}]   ;;  %s734_s4 = inlined_call_operand.vmem [shape: f32[1,128], index: 4, kind: input, shape index: {}]   ;;  %s735_s5 = inlined_call_operand.vmem [shape: f32[16,128], index: 5, kind: output, shape index: {}]  }
   0x1 LB: > { %s500_s19 = sadd.s32 4294967295, %s617_s18   ;;  %p504_p0 = scmp.ge.s32.totalorder %s617_s18, 1  ;;  %s617_s18 = sphi %s651_s18, %s15_s18  }
   0x2   : > { %p186_p1 = scmp.lt.s32.totalorder %s617_s18, 3 }
   0x4   : > { %p187_p2 = pnand %p504_p0, %p186_p1 }
   0x5   : > { %v595_v0 = vld [vmem:[%s731_s1] sm:$0xff] (!%p187_p2)   ;;  %v619_v1 = vmov (!%p187_p2), 0.0   ;;  %v596_v2 = vld [vmem:[%s731_s1 + $0x8] sm:$0xff] (!%p187_p2)   ;;  %vm620_vm0 = vmmov (!%p187_p2), 0   ;;  %v597_v3 = vld [vmem:[%s731_s1 + $0x10] sm:$0xff] (!%p187_p2)   ;;  %p212_p3 = scmp.lt.s32.totalorder (!%p187_p2), %s500_s19, 1 }
   0x6   : > { %190 = sbr.rel (%p187_p2) target bundleno = 471 (0x1d7), region = 40  ;;  %545 = vmatprep.subr.bf16.mxu0 (!%p187_p2), %v619_v1  ;;  %565 = vmatprep.subr.bf16.mxu1 (!%p187_p2), %v619_v1  ;;  %v603_v4 = vld [vmem:[%s733_s3] sm:$0xff] (!%p187_p2)   ;;  %v598_v5 = vld [vmem:[%s731_s1 + $0x18] sm:$0xff] (!%p187_p2)   ;;  %v604_v6 = vld [vmem:[%s733_s3 + $0x8] sm:$0xff] (!%p187_p2)  }
   0x7   : > { %546 = vmatpush3.bf16.msra.mxu0 (!%p187_p2), %v595_v0  ;;  %561 = vmatprep.mubr.msk.bf16.mxu0 (!%p187_p2), %vm620_vm0, %v619_v1  ;;  %v599_v7 = vld [vmem:[%s731_s1 + $0x20] sm:$0xff] (!%p187_p2)   ;;  %v605_v8 = vld [vmem:[%s733_s3 + $0x10] sm:$0xff] (!%p187_p2)   ;;  %v600_v9 = vld [vmem:[%s731_s1 + $0x28] sm:$0xff] (!%p187_p2)  }
   0x8   : > { %547 = vmatprep.subr.bf16.mxu0 (!%p187_p2), %v619_v1  ;;  %581 = vmatprep.mubr.msk.bf16.mxu1 (!%p187_p2), %vm620_vm0, %v619_v1  ;;  %v606_v10 = vld [vmem:[%s733_s3 + $0x18] sm:$0xff] (!%p187_p2)   ;;  %v601_v11 = vld [vmem:[%s731_s1 + $0x30] sm:$0xff] (!%p187_p2)   ;;  %v607_v12 = vld [vmem:[%s733_s3 + $0x20] sm:$0xff] (!%p187_p2)  }
   0x9   : > { %566 = vmatpush3.bf16.msra.mxu1 (!%p187_p2), %v603_v4  ;;  %v602_v13 = vld [vmem:[%s731_s1 + $0x38] sm:$0xff] (!%p187_p2)   ;;  %v608_v14 = vld [vmem:[%s733_s3 + $0x28] sm:$0xff] (!%p187_p2)   ;;  %v609_v16 = vld [vmem:[%s733_s3 + $0x30] sm:$0xff] (!%p187_p2)  }
   0xa   : > { %567 = vmatprep.subr.bf16.mxu1 (!%p187_p2), %v619_v1  ;;  %v610_v17 = vld [vmem:[%s733_s3 + $0x38] sm:$0xff] (!%p187_p2)   ;;  %v507_v18 = vld [vmem:[%s732_s2] ss:$0 sm:$0xff] (!%p187_p2) }
   0xb   : > { %548 = vmatpush3.bf16.msra.mxu0 (!%p187_p2), %v596_v2  ;;  %v516_v26 = vld [vmem:[%s734_s4] ss:$0 sm:$0xff] (!%p187_p2) }
   0xc   : > { %549 = vmatprep.subr.bf16.mxu0 (!%p187_p2), %v619_v1 }
   0xd   : > { %568 = vmatpush3.bf16.msra.mxu1 %v604_v6  ;;  %s737_s19 = smov (!%p212_p3, %s500_s19), 1 }
   0xe   : > { %569 = vmatprep.subr.bf16.mxu1 %v619_v1  ;;  %s505_s21 = sshll.u32 %s737_s19, 2  ;;  %s506_s10 = sshll.u32 %s737_s19, 3 }
   0xf   : > { %550 = vmatpush3.bf16.msra.mxu0 %v597_v3  ;;  %s215_s26 = scalar_lea.vmem %s730_s0, %s505_s21  ;;  %s219_s15 = scalar_lea.vmem %s735_s5, %s506_s10 }
  0x10   : > { %551 = vmatprep.subr.bf16.mxu0 %v619_v1  ;;  %v221_v15 = vld [vmem:[%s215_s26] sm:$0xf] }
  0x11   : > { %570 = vmatpush3.bf16.msra.mxu1 %v605_v8 }
  0x12   : > { %571 = vmatprep.subr.bf16.mxu1 %v619_v1 }
  0x13   : > { %552 = vmatpush3.bf16.msra.mxu0 %v598_v5 }
  0x14   : > { %553 = vmatprep.subr.bf16.mxu0 %v619_v1 }
  0x15   : > { %572 = vmatpush3.bf16.msra.mxu1 %v606_v10 }
  0x16   : > { %573 = vmatprep.subr.bf16.mxu1 %v619_v1 }
  0x17   : > { %554 = vmatpush3.bf16.msra.mxu0 %v599_v7 }
  0x18   : > { %555 = vmatprep.subr.bf16.mxu0 %v619_v1 }
  0x19   : > { %574 = vmatpush3.bf16.msra.mxu1 %v607_v12 }
  0x1a   : > { %575 = vmatprep.subr.bf16.mxu1 %v619_v1 }
  0x1b   : > { %556 = vmatpush3.bf16.msra.mxu0 %v600_v9 }
  0x1c   : > { %557 = vmatprep.subr.bf16.mxu0 %v619_v1 }
  0x1d   : > { %576 = vmatpush3.bf16.msra.mxu1 %v608_v14 }
  0x1e   : > { %577 = vmatprep.subr.bf16.mxu1 %v619_v1 }
  0x1f   : > { %558 = vmatpush3.bf16.msra.mxu0 %v601_v11 }
  0x20   : > { %559 = vmatprep.subr.bf16.mxu0 %v619_v1 }
  0x21   : > { %578 = vmatpush3.bf16.msra.mxu1 %v609_v16 }
  0x22   : > { %579 = vmatprep.subr.bf16.mxu1 %v619_v1 }
  0x23   : > { %560 = vmatpush3.bf16.msra.mxu0 %v602_v13 }
  0x25   : > { %580 = vmatpush3.bf16.msra.mxu1 %v610_v17 }
  0x26   : > { %562 = vmatmul.mubr.bf16.vlgmr.msra.gmra.mrb[0].mxu0 %v221_v15 }
  0xf9   : > { %v327_v19 = vpop.f32.mrb[0].mxu0 }
  0xfa   : > { %v328_v20 = vadd.f32 %v507_v18, %v327_v19  ;;  %v563_v21 = vpop.f32.mrb[1].mxu0 }
  0xfb   : > { %v330_v22 = vpop.f32.mrb[2].mxu0 }
  0xfc   : > { %v333_v23 = vmax.f32 %v328_v20, 0.0  ;;  %v564_v24 = vpop.f32.mrb[3].mxu0 }
  0xfe   : > { %v334_v25 = vpack.c.bf16 %v333_v23, %v333_v23 }
 0x100   : > { %582 = vmatmul.mubr.bf16.vlgmr.msra.gmra.mrb[0].mxu1 %v334_v25 }
 0x1d3   : > { %v440_v27 = vpop.f32.mrb[0].mxu1 }
 0x1d4   : > { %v441_v28 = vadd.f32 %v516_v26, %v440_v27  ;;  %v583_v29 = vpop.f32.mrb[1].mxu1 }
 0x1d5   : > { %v443_v30 = vpop.f32.mrb[2].mxu1 }
 0x1d6   : > { %446 = vst [vmem:[%s219_s15] sm:$0xff] %v441_v28  ;;  %v584_v31 = vpop.f32.mrb[3].mxu1 }
 0x1d7 PF: > { %s15_s18 = sadd.s32 1, %s617_s18  }
 0x1d8   : > { %p12_p4 = scmp.ge.s32.totalorder %s15_s18, 4  }
 0x1da   :  { %14 = sbr.rel (!%p12_p4) target bundleno = 1 (0x1), region = 70 }

</bundles_post_ra>
